<compile_context>
chip_gen: v7x
topology: tpu7x:2x2x1
jax: 0.10.0
libtpu: 0.0.40
codegen_flags: <defaults>
</compile_context>

<pallas_src>
import functools

import numpy as np
import jax
import jax.numpy as jnp
from jax.experimental import pallas as pl
from jax.experimental.pallas import tpu as pltpu

LANE = 128


# ----------------------------------------------------------------------------
# Pallas kernel: fused (transposed) GEMM + bias + per-channel PReLU
# ----------------------------------------------------------------------------
def _down_kernel(x_ref, w_ref, b_ref, a_ref, o_ref):
    # x: (1, K, TM) bf16   w: (Cout, K) bf16   b, a: (Cout, 1) f32   o: (1, Cout, TM)
    y = jnp.dot(w_ref[...], x_ref[0], preferred_element_type=jnp.float32)
    y = y + b_ref[...]                                   # lane-broadcast of (Cout, 1)
    y = jnp.where(y > 0.0, y, a_ref[...] * y)            # PReLU, f32 epilogue
    o_ref[0] = y.astype(o_ref.dtype)


def _round_up(x, m):
    return (x + m - 1) // m * m


def _choose_tm(mi, k, cout, out_itemsize):
    """Pick the pixel-tile width TM (lanes) for one grid step.

    Prefers: full per-image extent (always BlockSpec-legal), else the largest
    128-multiple divisor of Ho*Wo under a ~4 MiB/step VMEM budget, else pad.
    """
    budget = 4 * 1024 * 1024
    per_col = 2 * k + out_itemsize * cout          # bf16 input column + output column
    cap = budget // max(per_col, 1)
    cap = min(max(128, (cap // 128) * 128), 4096)
    if mi <= cap:
        return mi, False                           # full extent per image, no pad
    for tm in range(cap, 127, -128):               # largest 128-multiple divisor
        if mi % tm == 0:
            return tm, False
    return cap, True                               # fallback: pad Mi up to cap multiple


# ----------------------------------------------------------------------------
# DownLayer forward (NCHW in / NCHW out, like the PyTorch module)
# ----------------------------------------------------------------------------
@functools.partial(jax.jit, static_argnames=("out_dtype",))
def down_layer(x_nchw, w_oihw, bias, alpha, out_dtype=jnp.float32):
    """Conv2d(Cin, Cout, kernel=2, stride=2) + PReLU(Cout)."""
    N, Cin, H, W = x_nchw.shape
    Cout = w_oihw.shape[0]
    Ho, Wo = H // 2, W // 2
    Mi = Ho * Wo                                   # output pixels per image
    K = 4 * Cin

    # bf16 first (halves the rearrange pass), then ONE fused space-to-depth pass:
    # NCHW -> (N, K, Ho*Wo) with k = ci*4 + kh*2 + kw  (matches OIHW reshape exactly).
    xb = x_nchw.astype(jnp.bfloat16)
    xr = xb.reshape(N, Cin, Ho, 2, Wo, 2)
    xr = jnp.transpose(xr, (0, 1, 3, 5, 2, 4)).reshape(N, K, Mi)

    w2 = w_oihw.reshape(Cout, K).astype(jnp.bfloat16)        # no weight transpose needed
    b2 = bias.reshape(Cout, 1).astype(jnp.float32)
    a2 = alpha.reshape(Cout, 1).astype(jnp.float32)

    tm, pad_m = _choose_tm(Mi, K, Cout, np.dtype(out_dtype).itemsize)
    Mp = _round_up(Mi, tm) if pad_m else Mi
    if Mp != Mi:
        xr = jnp.pad(xr, ((0, 0), (0, 0), (0, Mp - Mi)))     # rare fallback path only
    n_tiles = Mp // tm
    # v7x has 2 TensorCores: avoid a single-step grid when the tile can be split legally.
    if N * n_tiles < 2 and tm % 256 == 0:
        tm //= 2
        n_tiles = Mp // tm

    out = pl.pallas_call(
        _down_kernel,
        out_shape=jax.ShapeDtypeStruct((N, Cout, Mp), out_dtype),
        grid=(N, n_tiles),
        in_specs=[
            pl.BlockSpec((1, K, tm), lambda n, t: (n, 0, t)),      # activation tile
            pl.BlockSpec((Cout, K), lambda n, t: (0, 0)),          # packed weights (const)
            pl.BlockSpec((Cout, 1), lambda n, t: (0, 0)),          # bias (const)
            pl.BlockSpec((Cout, 1), lambda n, t: (0, 0)),          # PReLU alpha (const)
        ],
        out_specs=pl.BlockSpec((1, Cout, tm), lambda n, t: (n, 0, t)),
        compiler_params=pltpu.CompilerParams(
            dimension_semantics=("parallel", "parallel"),
            vmem_limit_bytes=32 * 1024 * 1024,
        ),
    )(xr, w2, b2, a2)

    if Mp != Mi:
        out = out[:, :, :Mi]
    return out.reshape(N, Cout, Ho, Wo)                           # already NCHW


# ----------------------------------------------------------------------------
# Pure-JAX reference for verification
# ----------------------------------------------------------------------------
def reference_down_layer(x_nchw, w_oihw, bias, alpha):
    y = jax.lax.conv_general_dilated(
        x_nchw, w_oihw, window_strides=(2, 2), padding='VALID',
        dimension_numbers=('NCHW', 'OIHW', 'NCHW'),
        precision=jax.lax.Precision.HIGHEST)
    y = y + bias.reshape(1, -1, 1, 1)
    return jnp.where(y > 0, y, alpha.reshape(1, -1, 1, 1) * y)


# ----------------------------------------------------------------------------
if __name__ == "__main__":
    key = jax.random.PRNGKey(0)
    kx, kw, kb = jax.random.split(key, 3)

    # Small shapes consistent with DownLayer(num_channels_in=4, num_channels_out=8, ndims=2)
    N, Cin, H, W = 2, 4, 16, 16
    Cout = 8
    x = jax.random.normal(kx, (N, Cin, H, W), jnp.float32)
    w = jax.random.normal(kw, (Cout, Cin, 2, 2), jnp.float32) * ((4 * Cin) ** -0.5)
    b = jax.random.normal(kb, (Cout,), jnp.float32) * 0.05
    a = jnp.full((Cout,), 0.25, jnp.float32)       # PReLU default init (0.25 per channel)

    y = down_layer(x, w, b, a)
    y = jax.block_until_ready(y)

    y_ref = reference_down_layer(x, w, b, a)
    assert y.shape == (N, Cout, H // 2, W // 2)
    # bf16 matmul operands (f32 accumulation/epilogue) -> slightly loosened tolerance.
    if not bool(jnp.allclose(y, y_ref, rtol=2e-2, atol=2e-2)):
        raise SystemExit("FAILED: Pallas output does not match reference")
    print("KERNEL_OK")
</pallas_src>

<mosaic_0001>
module attributes {stable_mosaic.version = 11 : i64} {
  func.func @_down_kernel(%arg0: i32, %arg1: i32, %arg2: memref<1x16x64xbf16, #tpu.memory_space<vmem>>, %arg3: memref<8x16xbf16, #tpu.memory_space<vmem>>, %arg4: memref<8x1xf32, #tpu.memory_space<vmem>>, %arg5: memref<8x1xf32, #tpu.memory_space<vmem>>, %arg6: memref<1x8x64xf32, #tpu.memory_space<vmem>>) attributes {dimension_semantics = [#tpu.dimension_semantics<parallel>, #tpu.dimension_semantics<parallel>], iteration_bounds = array<i64: 2, 1>, scalar_prefetch = 0 : i64, scratch_operands = 0 : i64, tpu.core_type = #tpu.core_type<tc>, window_params = [{transform_indices = @transform_0, window_bounds = array<i64: 1, 16, 64>}, {pipeline_mode = #tpu.pipeline_mode<synchronous>, transform_indices = @transform_1, window_bounds = array<i64: 8, 16>}, {pipeline_mode = #tpu.pipeline_mode<synchronous>, transform_indices = @transform_2, window_bounds = array<i64: 8, 1>}, {pipeline_mode = #tpu.pipeline_mode<synchronous>, transform_indices = @transform_3, window_bounds = array<i64: 8, 1>}, {transform_indices = @transform_4, window_bounds = array<i64: 1, 8, 64>}]} {
    %c0 = arith.constant 0 : index
    %c0_0 = arith.constant 0 : index
    %0 = vector.load %arg3[%c0, %c0_0] : memref<8x16xbf16, #tpu.memory_space<vmem>>, vector<8x16xbf16>
    %c0_1 = arith.constant 0 : index
    %c0_2 = arith.constant 0 : index
    %c0_3 = arith.constant 0 : index
    %1 = vector.load %arg2[%c0_1, %c0_2, %c0_3] : memref<1x16x64xbf16, #tpu.memory_space<vmem>>, vector<1x16x64xbf16>
    %2 = vector.shape_cast %1 : vector<1x16x64xbf16> to vector<16x64xbf16>
    %cst = arith.constant dense<0.000000e+00> : vector<8x64xf32>
    %3 = tpu.matmul %0, %2, %cst {dimension_numbers = #tpu.dot_dimension_numbers<[1], [0], [0], [1], [0, 0, 1, 1], [], []>} : vector<8x16xbf16>, vector<16x64xbf16>, vector<8x64xf32> -> vector<8x64xf32>
    %c0_4 = arith.constant 0 : index
    %c0_5 = arith.constant 0 : index
    %4 = vector.load %arg4[%c0_4, %c0_5] : memref<8x1xf32, #tpu.memory_space<vmem>>, vector<8x1xf32>
    %5 = vector.broadcast %4 : vector<8x1xf32> to vector<8x64xf32>
    %6 = arith.addf %3, %5 : vector<8x64xf32>
    %cst_6 = arith.constant 0.000000e+00 : f32
    %7 = vector.broadcast %cst_6 : f32 to vector<8x64xf32>
    %8 = arith.cmpf ogt, %6, %7 : vector<8x64xf32>
    %c0_7 = arith.constant 0 : index
    %c0_8 = arith.constant 0 : index
    %9 = vector.load %arg5[%c0_7, %c0_8] : memref<8x1xf32, #tpu.memory_space<vmem>>, vector<8x1xf32>
    %10 = vector.broadcast %9 : vector<8x1xf32> to vector<8x64xf32>
    %11 = arith.mulf %10, %6 : vector<8x64xf32>
    %12 = arith.select %8, %6, %11 : vector<8x64xi1>, vector<8x64xf32>
    %c0_9 = arith.constant 0 : index
    %c0_10 = arith.constant 0 : index
    %c0_11 = arith.constant 0 : index
    %13 = vector.load %arg6[%c0_9, %c0_10, %c0_11] : memref<1x8x64xf32, #tpu.memory_space<vmem>>, vector<1x8x64xf32>
    %14 = vector.shape_cast %13 : vector<1x8x64xf32> to vector<8x64xf32>
    %15 = vector.shape_cast %12 : vector<8x64xf32> to vector<1x8x64xf32>
    tpu.vector_store %arg6[%c0_9, %c0_10, %c0_11], %15 {strides = array<i32>} : memref<1x8x64xf32, #tpu.memory_space<vmem>>, vector<1x8x64xf32>,
    return
  }
  func.func @transform_0(%arg0: i32, %arg1: i32) -> (i32, i32, i32) {
    %c0_i32 = arith.constant 0 : i32
    %c0_i32_0 = arith.constant 0 : i32
    return %arg0, %c0_i32, %arg1 : i32, i32, i32
  }
  func.func @transform_1(%arg0: i32, %arg1: i32) -> (i32, i32) {
    %c0_i32 = arith.constant 0 : i32
    %c0_i32_0 = arith.constant 0 : i32
    %c0_i32_1 = arith.constant 0 : i32
    return %c0_i32, %c0_i32_0 : i32, i32
  }
  func.func @transform_2(%arg0: i32, %arg1: i32) -> (i32, i32) {
    %c0_i32 = arith.constant 0 : i32
    %c0_i32_0 = arith.constant 0 : i32
    %c0_i32_1 = arith.constant 0 : i32
    return %c0_i32, %c0_i32_0 : i32, i32
  }
  func.func @transform_3(%arg0: i32, %arg1: i32) -> (i32, i32) {
    %c0_i32 = arith.constant 0 : i32
    %c0_i32_0 = arith.constant 0 : i32
    %c0_i32_1 = arith.constant 0 : i32
    return %c0_i32, %c0_i32_0 : i32, i32
  }
  func.func @transform_4(%arg0: i32, %arg1: i32) -> (i32, i32, i32) {
    %c0_i32 = arith.constant 0 : i32
    %c0_i32_0 = arith.constant 0 : i32
    return %arg0, %c0_i32, %arg1 : i32, i32, i32
  }
}

</mosaic_0001>

<bundles_post_ra>
// kernel: down_layer.1
= control target key start
LH: loop header
LB: loop body
LE: loop exit
PB: predicated region body
PF: predicated region fallthrough
CT: control target
= control target key end

     0   :  { %s477_s15 = smov 0   ;;  %s479_s16 = smov 0   ;;  %s519_s0 = inlined_call_operand.vmem [shape: bf16[2,16,64], index: 0, kind: input, shape index: {}]   ;;  %s520_s1 = inlined_call_operand.vmem [shape: bf16[8,16], index: 1, kind: input, shape index: {}]   ;;  %s521_s2 = inlined_call_operand.vmem [shape: f32[8,1], index: 2, kind: input, shape index: {}]   ;;  %s522_s3 = inlined_call_operand.vmem [shape: f32[8,1], index: 3, kind: input, shape index: {}]   ;;  %s523_s4 = inlined_call_operand.vmem [shape: f32[2,8,64], index: 4, kind: output, shape index: {}]  }
   0x1   :  { %s481_s17 = smov 0  }
   0x2 LB: > { %s26_s18 = sadd.s32 1, %s443_s16  ;;  %p379_p0 = scmp.ge.s32.totalorder %s447_s17, 1  ;;  %s447_s17 = sphi %s481_s17, %s14_s17   ;;  %s443_s16 = sphi %s479_s16, %s525_s16   ;;  %s439_s15 = sphi %s477_s15, %s524_s15  }
   0x3   : > { %p28_p1 = scmp.ge.s32.totalorder %s26_s18, 2  ;;  %p181_p2 = scmp.lt.s32.totalorder %s447_s17, 3 }
   0x5   : > { %s527_s18 = smov (%p28_p1, %s26_s18), 0  ;;  %p182_p3 = pnand %p379_p0, %p181_p2 }
   0x6   : > { %p212_p4 = scmp.lt.s32.totalorder (!%p182_p3), %s439_s15, 1  ;;  %v449_v0 = vmov (!%p182_p3), 0.0   ;;  %vm450_vm0 = vmmov (!%p182_p3), 0   ;;  %v231_v1 = vld [vmem:[%s521_s2] sm:$0xff] (!%p182_p3)  ;;  %v451_v2 = vmov (!%p182_p3), 0   ;;  %vm243_vm1 = vcmask (!%p182_p3), 130048  }
   0x7   : > { %185 = sbr.rel (%p182_p3) target bundleno = 239 (0xef), region = 36  ;;  %390 = vmatprep.subr.bf16.mxu0 (!%p182_p3), %v449_v0  ;;  %392 = vmatprep.mubr.msk.bf16.mxu0 (!%p182_p3), %vm450_vm0, %v449_v0  ;;  %v288_v3 = vld [vmem:[%s522_s3] sm:$0xff] (!%p182_p3)  ;;  %vm296_vm3 = vcmask (!%p182_p3), 523264  }
   0x8   : > { %423 = vset.pattern.permute.xlu0 (!%p182_p3), %v451_v2  ;;  %v228_v5 = vld [vmem:[%s520_s1] sm:$0xf] (!%p182_p3) }
   0x9   : > { %234 = vperm.xlu0 (!%p182_p3), %423, %v231_v1  }
   0xd   : > { %291 = vperm.xlu0 (!%p182_p3), %423, %v288_v3  }
   0xe   : > { %s529_s15 = smov (!%p212_p4, %s439_s15), 1 }
   0xf   : > { %s387_s21 = sshll.u32 %s529_s15, 3 }
  0x10   : > { %s219_s26 = scalar_lea.vmem %s519_s0, %s387_s21  ;;  %s226_s5 = scalar_lea.vmem %s523_s4, %s387_s21 }
  0x11   : > { %v424_v4 = vld [vmem:[%s219_s26] sm:$0xff]  }
  0x12   : > { %391 = vmatpush3.bf16.msra.mxu0 %v424_v4 }
  0x15   : > { %393 = vmatmul.mubr.msk.bf16.vlgmr.msra.gmra.mrb[0].mxu0 %vm243_vm1, %v228_v5 }
  0x88   : > { %v235_v6 = vpop.permute.xlu0 %234 }
  0x8c   : > { %v292_v10 = vpop.permute.xlu0 %291 }
  0xe8   : > { %v281_v7 = vpop.f32.mrb[0].mxu0 }
  0xe9   : > { %v282_v8 = vadd.f32 %v281_v7, %v235_v6  ;;  %v394_v9 = vpop.f32.mrb[1].mxu0 }
  0xea   : > { %v284_v11 = vpop.f32.mrb[2].mxu0 }
  0xeb   : > { %vm287_vm2 = vcmp.gt.f32.partialorder %v282_v8, 0.0  ;;  %v294_v12 = vmul.f32 %v292_v10, %v282_v8  ;;  %v395_v13 = vpop.f32.mrb[3].mxu0 }
  0xed   : > { %v295_v14 = vsel %vm287_vm2, %v282_v8, %v294_v12 }
  0xee   : > { %297 = vst.msk [vmem:[%s226_s5] sm:$0xff] %vm296_vm3, %v295_v14 }
  0xef PF: > { %s14_s17 = sadd.s32 1, %s447_s17   ;;  %s524_s15 = smov %s443_s16 }
  0xf0   : > { %p11_p5 = scmp.ge.s32.totalorder %s14_s17, 4   ;;  %s525_s16 = smov %s527_s18 }
  0xf2   :  { %13 = sbr.rel (!%p11_p5) target bundleno = 2 (0x2), region = 66 }

</bundles_post_ra>
